<compile_context>
chip_gen: v6e
topology: v6e:2x2x1
jax: 0.10.0
libtpu: 0.0.40
codegen_flags: <defaults>
</compile_context>

<pallas_src>
import functools

import jax
import jax.numpy as jnp
from jax.experimental import pallas as pl
from jax.experimental.pallas import tpu as pltpu


def _make_kernel(C, Cout, H, W, KH, KW, OH, OW, Hp, Wp, Bt,
                 stride, padding, dilation, rhs_dtype):
    """Builds the per-grid-step kernel (one step = `Bt` images)."""
    # Extra zero rows appended to the flat slab so every tap's lane slice
    # [off, off + NF) stays in bounds: off_max = (KH-1)*d*Wp + (KW-1)*d < ER*Wp.
    ER = (KH - 1) * dilation + 1
    ROWS = Bt * Hp + ER            # padded rows held in VMEM per grid step
    NF = Bt * Hp * Wp              # matmul N: padded-flat columns (b, h, w)
    taps = [(kh, kw) for kh in range(KH) for kw in range(KW)]

    def kernel(x_ref, w_ref, cb_ref, o_ref, xpad_ref, rhs_ref):
        # x_ref:    (Bt, C, H, W)        real input channels only (no coords)
        # w_ref:    (Cout, KH*KW*C)      tap-major / in-channel-minor weight
        # cb_ref:   (Cout, OH*OW)        precomputed coord-conv + bias slab (f32)
        # o_ref:    (Bt, Cout, OH*OW)    lane-dense output slab
        # xpad_ref: (C, Bt*Hp + ER, Wp)  zero-padded images stacked along rows
        # rhs_ref:  (KH*KW*C, NF)        lane-dense im2col RHS

        # Memset the padded slab every step.  A program_id==0 one-shot memset
        # is NOT safe: the batch axis is "parallel", so on a multi-TC chip each
        # core runs an arbitrary subset of steps with its own core-local
        # scratch.  The memset is one cheap pass over a small slab.
        xpad_ref[...] = jnp.zeros_like(xpad_ref)

        # Interior fill: one windowed store per image; borders stay zero.
        for b in range(Bt):
            r0 = b * Hp + padding
            xpad_ref[:, r0:r0 + H, padding:padding + W] = \
                x_ref[b].astype(rhs_dtype)

        # Flatten (b, h, w) onto the lane axis once; afterwards every conv tap
        # is a pure lane-offset slice of this flat slab, written directly into
        # the lane-dense im2col scratch (no per-tap relayout, no concat).
        xflat = xpad_ref[...].reshape(C, ROWS * Wp)
        for t, (kh, kw) in enumerate(taps):
            off = kh * dilation * Wp + kw * dilation
            rhs_ref[t * C:(t + 1) * C, :] = xflat[:, off:off + NF]

        # Single MXU matmul per step, f32 accumulation.
        acc = jnp.dot(w_ref[...], rhs_ref[...],
                      preferred_element_type=jnp.float32)        # (Cout, NF)

        # Extract valid output columns (only Cout rows relaid out), add the
        # folded coord+bias slab, store lane-dense per image.
        out4 = acc.reshape(Cout, Bt, Hp, Wp)
        for b in range(Bt):
            if stride == 1:
                v = out4[:, b, :OH, :OW]                         # (Cout, OH, OW)
            else:
                # TODO(synk): stride>1 (stride-1 im2col + strided down-sample)
                # is implemented but not exercised by the demo below.
                v = jax.lax.slice(
                    out4, (0, b, 0, 0),
                    (Cout, b + 1, (OH - 1) * stride + 1, (OW - 1) * stride + 1),
                    (1, 1, stride, stride))[:, 0]
            v = v.reshape(Cout, OH * OW) + cb_ref[...]
            o_ref[b] = v.astype(o_ref.dtype)

    return kernel


def coord_conv2d_forward(x_nchw, weight_oihw, bias, *, stride=1, padding=0,
                         dilation=1, batch_tile=1, matmul_dtype=None):
    """Forward pass of CoordConv2d (groups=1, NCHW), matching the PyTorch module.

    batch_tile: images folded into one grid step (one MXU matmul).  Pick it so
    that B // batch_tile >= 2 (keeps both TCs busy on 2-TC chips) and
    batch_tile * OH * OW is large enough to fill the MXU N dimension.
    """
    # TODO(synk): groups > 1 is not implemented (module default is groups=1).
    B, C, H, W = x_nchw.shape
    # add_coords builds both coordinate maps from input.shape[-1]; the torch
    # module's channel concat only works for square inputs.
    assert H == W, "CoordConv2d.add_coords assumes H == W"
    Cout, Cin2, KH, KW = weight_oihw.shape
    assert Cin2 == C + 2, "weight must have in_channels + 2 input channels"
    assert B % batch_tile == 0, "batch_tile must divide the batch"
    dtype = x_nchw.dtype

    Hp, Wp = H + 2 * padding, W + 2 * padding
    OH = (Hp - dilation * (KH - 1) - 1) // stride + 1
    OW = (Wp - dilation * (KW - 1) - 1) // stride + 1

    # ---- Constant coord-channel contribution folded into a bias slab --------
    # torch.range(-1, 1, 2/(W-1)) == linspace(-1, 1, W) for well-behaved W
    # (torch.range is endpoint-inclusive; exact rounding may differ for odd W).
    aux = jnp.linspace(-1.0, 1.0, W, dtype=jnp.float32)
    coords = jnp.stack([jnp.broadcast_to(aux[:, None], (H, W)),   # i: varies over H
                        jnp.broadcast_to(aux[None, :], (H, W))],  # j: varies over W
                       axis=0)[None]                              # (1, 2, H, W)
    w_coord = weight_oihw[:, C:, :, :].astype(jnp.float32)        # (Cout, 2, KH, KW)
    cb = jax.lax.conv_general_dilated(
        coords, w_coord,
        window_strides=(stride, stride),
        padding=[(padding, padding), (padding, padding)],
        rhs_dilation=(dilation, dilation),
        dimension_numbers=("NCHW", "OIHW", "NCHW"),
        precision=jax.lax.Precision.HIGHEST)[0]                   # (Cout, OH, OW)
    cb = (cb + bias.astype(jnp.float32)[:, None, None]).reshape(Cout, OH * OW)

    # ---- Weight for the real input channels: tap-major / channel-minor ------
    w2 = jnp.transpose(weight_oihw[:, :C, :, :], (0, 2, 3, 1)).reshape(
        Cout, KH * KW * C)
    rhs_dtype = matmul_dtype if matmul_dtype is not None else dtype
    w2 = w2.astype(rhs_dtype)              # cast once here, not per grid step

    Bt = batch_tile
    ER = (KH - 1) * dilation + 1
    kernel = _make_kernel(C, Cout, H, W, KH, KW, OH, OW, Hp, Wp, Bt,
                          stride, padding, dilation, rhs_dtype)

    out_flat = pl.pallas_call(
        kernel,
        out_shape=jax.ShapeDtypeStruct((B, Cout, OH * OW), dtype),
        grid_spec=pltpu.PrefetchScalarGridSpec(
            num_scalar_prefetch=0,
            grid=(B // Bt,),
            in_specs=[
                pl.BlockSpec((Bt, C, H, W), lambda g: (g, 0, 0, 0)),
                pl.BlockSpec((Cout, KH * KW * C), lambda g: (0, 0)),
                pl.BlockSpec((Cout, OH * OW), lambda g: (0, 0)),
            ],
            out_specs=pl.BlockSpec((Bt, Cout, OH * OW), lambda g: (g, 0, 0)),
            scratch_shapes=[
                pltpu.VMEM((C, Bt * Hp + ER, Wp), rhs_dtype),       # padded images
                pltpu.VMEM((KH * KW * C, Bt * Hp * Wp), rhs_dtype), # im2col RHS
            ]),
        compiler_params=pltpu.CompilerParams(
            dimension_semantics=("parallel",),
            vmem_limit_bytes=32 * 1024 * 1024),
    )(x_nchw, w2, cb)

    return out_flat.reshape(B, Cout, OH, OW)   # free reshape back to NCHW


def _reference_forward(x_nchw, weight_oihw, bias, *, stride, padding, dilation):
    """Pure-JAX reference (same semantics) for the correctness check."""
    B, C, H, W = x_nchw.shape
    aux = jnp.linspace(-1.0, 1.0, W, dtype=x_nchw.dtype)
    i_coord = jnp.broadcast_to(aux[None, None, :, None], (B, 1, W, W))
    j_coord = jnp.broadcast_to(aux[None, None, None, :], (B, 1, W, W))
    x_cat = jnp.concatenate([x_nchw, i_coord, j_coord], axis=1)
    out = jax.lax.conv_general_dilated(
        x_cat, weight_oihw,
        window_strides=(stride, stride),
        padding=[(padding, padding), (padding, padding)],
        rhs_dilation=(dilation, dilation),
        dimension_numbers=("NCHW", "OIHW", "NCHW"),
        precision=jax.lax.Precision.HIGHEST)
    return out + bias[None, :, None, None]


if __name__ == "__main__":
    # Small, deterministic config (matches the module's expected shapes).
    B, Cin, H, W = 2, 4, 16, 16
    Cout, K = 8, 3
    Cin2 = Cin + 2

    key = jax.random.PRNGKey(0)
    kx, kw, kb = jax.random.split(key, 3)
    x = jax.random.normal(kx, (B, Cin, H, W), dtype=jnp.float32)

    # Deterministic Conv2d-style init: uniform(-1/sqrt(fan_in), 1/sqrt(fan_in)).
    fan_in = Cin2 * K * K
    bound = 1.0 / (fan_in ** 0.5)
    weight = jax.random.uniform(kw, (Cout, Cin2, K, K), jnp.float32, -bound, bound)
    bias = jax.random.uniform(kb, (Cout,), jnp.float32, -bound, bound)

    cfgs = [
        dict(stride=1, padding=1, dilation=1, batch_tile=1),  # "same" conv, 2 parallel steps
        dict(stride=1, padding=1, dilation=1, batch_tile=2),  # batch folded into matmul N
        dict(stride=1, padding=2, dilation=2, batch_tile=1),  # dilation path
        dict(stride=1, padding=0, dilation=1, batch_tile=2),  # unpadded path
    ]
    for cfg in cfgs:
        fwd = jax.jit(functools.partial(coord_conv2d_forward, **cfg))
        out = jax.block_until_ready(fwd(x, weight, bias))
        ref = _reference_forward(x, weight, bias, stride=cfg["stride"],
                                 padding=cfg["padding"], dilation=cfg["dilation"])
        assert out.shape == ref.shape, cfg
        assert jnp.allclose(out, ref, rtol=1e-4, atol=1e-4), cfg

    # bf16 MXU operands (weights pre-cast in the wrapper) with f32 accumulation;
    # looser tolerance because operands are rounded to bf16.
    fwd_bf16 = jax.jit(functools.partial(
        coord_conv2d_forward, stride=1, padding=1, dilation=1,
        batch_tile=2, matmul_dtype=jnp.bfloat16))
    out_bf16 = jax.block_until_ready(fwd_bf16(x, weight, bias))
    ref = _reference_forward(x, weight, bias, stride=1, padding=1, dilation=1)
    assert out_bf16.shape == ref.shape
    assert jnp.allclose(out_bf16, ref, rtol=2e-2, atol=5e-2)

    print("KERNEL_OK")
</pallas_src>

<mosaic_0001>
module attributes {stable_mosaic.version = 11 : i64} {
  func.func @kernel(%arg0: i32, %arg1: memref<1x4x16x16xf32, #tpu.memory_space<vmem>>, %arg2: memref<8x36xf32, #tpu.memory_space<vmem>>, %arg3: memref<8x256xf32, #tpu.memory_space<vmem>>, %arg4: memref<1x8x256xf32, #tpu.memory_space<vmem>>, %arg5: memref<4x21x18xf32, #tpu.memory_space<vmem>>, %arg6: memref<36x324xf32, #tpu.memory_space<vmem>>) attributes {dimension_semantics = [#tpu.dimension_semantics<parallel>], iteration_bounds = array<i64: 2>, scalar_prefetch = 0 : i64, scratch_operands = 2 : i64, tpu.core_type = #tpu.core_type<tc>, window_params = [{transform_indices = @transform_0, window_bounds = array<i64: 1, 4, 16, 16>}, {pipeline_mode = #tpu.pipeline_mode<synchronous>, transform_indices = @transform_1, window_bounds = array<i64: 8, 36>}, {pipeline_mode = #tpu.pipeline_mode<synchronous>, transform_indices = @transform_2, window_bounds = array<i64: 8, 256>}, {transform_indices = @transform_3, window_bounds = array<i64: 1, 8, 256>}]} {
    %cst = arith.constant 0.000000e+00 : f32
    %0 = vector.broadcast %cst : f32 to vector<4x21x18xf32>
    %c0 = arith.constant 0 : index
    %c0_0 = arith.constant 0 : index
    %c0_1 = arith.constant 0 : index
    %1 = vector.load %arg5[%c0, %c0_0, %c0_1] : memref<4x21x18xf32, #tpu.memory_space<vmem>>, vector<4x21x18xf32>
    tpu.vector_store %arg5[%c0, %c0_0, %c0_1], %0 {strides = array<i32>} : memref<4x21x18xf32, #tpu.memory_space<vmem>>, vector<4x21x18xf32>,
    %c0_2 = arith.constant 0 : index
    %c0_3 = arith.constant 0 : index
    %c0_4 = arith.constant 0 : index
    %c0_5 = arith.constant 0 : index
    %2 = vector.load %arg1[%c0_2, %c0_3, %c0_4, %c0_5] : memref<1x4x16x16xf32, #tpu.memory_space<vmem>>, vector<1x4x16x16xf32>
    %3 = vector.shape_cast %2 : vector<1x4x16x16xf32> to vector<4x16x16xf32>
    %c0_6 = arith.constant 0 : index
    %c1 = arith.constant 1 : index
    %c1_7 = arith.constant 1 : index
    %4 = vector.load %arg5[%c0_6, %c1, %c1_7] : memref<4x21x18xf32, #tpu.memory_space<vmem>>, vector<4x16x16xf32>
    tpu.vector_store %arg5[%c0_6, %c1, %c1_7], %3 {strides = array<i32>} : memref<4x21x18xf32, #tpu.memory_space<vmem>>, vector<4x16x16xf32>,
    %c0_8 = arith.constant 0 : index
    %c0_9 = arith.constant 0 : index
    %c0_10 = arith.constant 0 : index
    %5 = vector.load %arg5[%c0_8, %c0_9, %c0_10] : memref<4x21x18xf32, #tpu.memory_space<vmem>>, vector<4x21x18xf32>
    %6 = vector.shape_cast %5 : vector<4x21x18xf32> to vector<4x378xf32>
    %7 = vector.extract_strided_slice %6 {offsets = [0, 0], sizes = [4, 324], strides = [1, 1]} : vector<4x378xf32> to vector<4x324xf32>
    %c0_11 = arith.constant 0 : index
    %c0_12 = arith.constant 0 : index
    %8 = vector.load %arg6[%c0_11, %c0_12] : memref<36x324xf32, #tpu.memory_space<vmem>>, vector<4x324xf32>
    tpu.vector_store %arg6[%c0_11, %c0_12], %7 {strides = array<i32>} : memref<36x324xf32, #tpu.memory_space<vmem>>, vector<4x324xf32>,
    %9 = vector.extract_strided_slice %6 {offsets = [0, 1], sizes = [4, 324], strides = [1, 1]} : vector<4x378xf32> to vector<4x324xf32>
    %c4 = arith.constant 4 : index
    %c0_13 = arith.constant 0 : index
    %10 = vector.load %arg6[%c4, %c0_13] : memref<36x324xf32, #tpu.memory_space<vmem>>, vector<4x324xf32>
    tpu.vector_store %arg6[%c4, %c0_13], %9 {strides = array<i32>} : memref<36x324xf32, #tpu.memory_space<vmem>>, vector<4x324xf32>,
    %11 = vector.extract_strided_slice %6 {offsets = [0, 2], sizes = [4, 324], strides = [1, 1]} : vector<4x378xf32> to vector<4x324xf32>
    %c8 = arith.constant 8 : index
    %c0_14 = arith.constant 0 : index
    %12 = vector.load %arg6[%c8, %c0_14] : memref<36x324xf32, #tpu.memory_space<vmem>>, vector<4x324xf32>
    tpu.vector_store %arg6[%c8, %c0_14], %11 {strides = array<i32>} : memref<36x324xf32, #tpu.memory_space<vmem>>, vector<4x324xf32>,
    %13 = vector.extract_strided_slice %6 {offsets = [0, 18], sizes = [4, 324], strides = [1, 1]} : vector<4x378xf32> to vector<4x324xf32>
    %c12 = arith.constant 12 : index
    %c0_15 = arith.constant 0 : index
    %14 = vector.load %arg6[%c12, %c0_15] : memref<36x324xf32, #tpu.memory_space<vmem>>, vector<4x324xf32>
    tpu.vector_store %arg6[%c12, %c0_15], %13 {strides = array<i32>} : memref<36x324xf32, #tpu.memory_space<vmem>>, vector<4x324xf32>,
    %15 = vector.extract_strided_slice %6 {offsets = [0, 19], sizes = [4, 324], strides = [1, 1]} : vector<4x378xf32> to vector<4x324xf32>
    %c16 = arith.constant 16 : index
    %c0_16 = arith.constant 0 : index
    %16 = vector.load %arg6[%c16, %c0_16] : memref<36x324xf32, #tpu.memory_space<vmem>>, vector<4x324xf32>
    tpu.vector_store %arg6[%c16, %c0_16], %15 {strides = array<i32>} : memref<36x324xf32, #tpu.memory_space<vmem>>, vector<4x324xf32>,
    %17 = vector.extract_strided_slice %6 {offsets = [0, 20], sizes = [4, 324], strides = [1, 1]} : vector<4x378xf32> to vector<4x324xf32>
    %c20 = arith.constant 20 : index
    %c0_17 = arith.constant 0 : index
    %18 = vector.load %arg6[%c20, %c0_17] : memref<36x324xf32, #tpu.memory_space<vmem>>, vector<4x324xf32>
    tpu.vector_store %arg6[%c20, %c0_17], %17 {strides = array<i32>} : memref<36x324xf32, #tpu.memory_space<vmem>>, vector<4x324xf32>,
    %19 = vector.extract_strided_slice %6 {offsets = [0, 36], sizes = [4, 324], strides = [1, 1]} : vector<4x378xf32> to vector<4x324xf32>
    %c24 = arith.constant 24 : index
    %c0_18 = arith.constant 0 : index
    %20 = vector.load %arg6[%c24, %c0_18] : memref<36x324xf32, #tpu.memory_space<vmem>>, vector<4x324xf32>
    tpu.vector_store %arg6[%c24, %c0_18], %19 {strides = array<i32>} : memref<36x324xf32, #tpu.memory_space<vmem>>, vector<4x324xf32>,
    %21 = vector.extract_strided_slice %6 {offsets = [0, 37], sizes = [4, 324], strides = [1, 1]} : vector<4x378xf32> to vector<4x324xf32>
    %c28 = arith.constant 28 : index
    %c0_19 = arith.constant 0 : index
    %22 = vector.load %arg6[%c28, %c0_19] : memref<36x324xf32, #tpu.memory_space<vmem>>, vector<4x324xf32>
    tpu.vector_store %arg6[%c28, %c0_19], %21 {strides = array<i32>} : memref<36x324xf32, #tpu.memory_space<vmem>>, vector<4x324xf32>,
    %23 = vector.extract_strided_slice %6 {offsets = [0, 38], sizes = [4, 324], strides = [1, 1]} : vector<4x378xf32> to vector<4x324xf32>
    %c32 = arith.constant 32 : index
    %c0_20 = arith.constant 0 : index
    %24 = vector.load %arg6[%c32, %c0_20] : memref<36x324xf32, #tpu.memory_space<vmem>>, vector<4x324xf32>
    tpu.vector_store %arg6[%c32, %c0_20], %23 {strides = array<i32>} : memref<36x324xf32, #tpu.memory_space<vmem>>, vector<4x324xf32>,
    %c0_21 = arith.constant 0 : index
    %c0_22 = arith.constant 0 : index
    %25 = vector.load %arg2[%c0_21, %c0_22] : memref<8x36xf32, #tpu.memory_space<vmem>>, vector<8x36xf32>
    %c0_23 = arith.constant 0 : index
    %c0_24 = arith.constant 0 : index
    %26 = vector.load %arg6[%c0_23, %c0_24] : memref<36x324xf32, #tpu.memory_space<vmem>>, vector<36x324xf32>
    %cst_25 = arith.constant dense<0.000000e+00> : vector<8x324xf32>
    %27 = tpu.matmul %25, %26, %cst_25 {dimension_numbers = #tpu.dot_dimension_numbers<[1], [0], [0], [1], [0, 0, 1, 1], [], []>} : vector<8x36xf32>, vector<36x324xf32>, vector<8x324xf32> -> vector<8x324xf32>
    %28 = vector.shape_cast %27 : vector<8x324xf32> to vector<8x1x18x18xf32>
    %29 = vector.extract_strided_slice %28 {offsets = [0, 0, 0, 0], sizes = [8, 1, 16, 16], strides = [1, 1, 1, 1]} : vector<8x1x18x18xf32> to vector<8x1x16x16xf32>
    %30 = vector.shape_cast %29 : vector<8x1x16x16xf32> to vector<8x16x16xf32>
    %31 = vector.shape_cast %30 : vector<8x16x16xf32> to vector<8x256xf32>
    %c0_26 = arith.constant 0 : index
    %c0_27 = arith.constant 0 : index
    %32 = vector.load %arg3[%c0_26, %c0_27] : memref<8x256xf32, #tpu.memory_space<vmem>>, vector<8x256xf32>
    %33 = arith.addf %31, %32 : vector<8x256xf32>
    %c0_28 = arith.constant 0 : index
    %c0_29 = arith.constant 0 : index
    %c0_30 = arith.constant 0 : index
    %34 = vector.load %arg4[%c0_28, %c0_29, %c0_30] : memref<1x8x256xf32, #tpu.memory_space<vmem>>, vector<1x8x256xf32>
    %35 = vector.shape_cast %34 : vector<1x8x256xf32> to vector<8x256xf32>
    %36 = vector.shape_cast %33 : vector<8x256xf32> to vector<1x8x256xf32>
    tpu.vector_store %arg4[%c0_28, %c0_29, %c0_30], %36 {strides = array<i32>} : memref<1x8x256xf32, #tpu.memory_space<vmem>>, vector<1x8x256xf32>,
    return
  }
  func.func @transform_0(%arg0: i32) -> (i32, i32, i32, i32) {
    %c0_i32 = arith.constant 0 : i32
    %c0_i32_0 = arith.constant 0 : i32
    %c0_i32_1 = arith.constant 0 : i32
    %c0_i32_2 = arith.constant 0 : i32
    return %arg0, %c0_i32, %c0_i32_0, %c0_i32_1 : i32, i32, i32, i32
  }
  func.func @transform_1(%arg0: i32) -> (i32, i32) {
    %c0_i32 = arith.constant 0 : i32
    %c0_i32_0 = arith.constant 0 : i32
    %c0_i32_1 = arith.constant 0 : i32
    return %c0_i32, %c0_i32_0 : i32, i32
  }
  func.func @transform_2(%arg0: i32) -> (i32, i32) {
    %c0_i32 = arith.constant 0 : i32
    %c0_i32_0 = arith.constant 0 : i32
    %c0_i32_1 = arith.constant 0 : i32
    return %c0_i32, %c0_i32_0 : i32, i32
  }
  func.func @transform_3(%arg0: i32) -> (i32, i32, i32) {
    %c0_i32 = arith.constant 0 : i32
    %c0_i32_0 = arith.constant 0 : i32
    %c0_i32_1 = arith.constant 0 : i32
    return %arg0, %c0_i32, %c0_i32_0 : i32, i32, i32
  }
}

</mosaic_0001>

<bundles_post_ra>
// kernel: coord_conv2d_forward.1
= control target key start
LH: loop header
LB: loop body
LE: loop exit
PB: predicated region body
PF: predicated region fallthrough
CT: control target
= control target key end

     0   :  { %s1794_s12 = smov 0   ;;  %s2059_s0 = inlined_call_operand.vmem [shape: f32[2,4,16,16], index: 0, kind: input, shape index: {}]   ;;  %s2060_s1 = inlined_call_operand.vmem [shape: f32[8,36], index: 1, kind: input, shape index: {}]   ;;  %s2061_s2 = inlined_call_operand.vmem [shape: f32[8,256], index: 2, kind: input, shape index: {}]   ;;  %s2062_s3 = inlined_call_operand.vmem [shape: f32[2,8,256], index: 3, kind: output, shape index: {}]  }
   0x1 LB: > { %s1593_s13 = sadd.s32 4294967295, %s1725_s12   ;;  %p1597_p0 = scmp.ge.s32.totalorder %s1725_s12, 1  ;;  %s1725_s12 = sphi %s1794_s12, %s13_s12  }
   0x2   : > { %p137_p1 = scmp.lt.s32.totalorder %s1725_s12, 3 }
   0x4   : > { %p138_p2 = pnand %p1597_p0, %p137_p1 }
   0x5   : > { %p1802_p3 = scmp.lt.s32.totalorder (!%p138_p2), %s1593_s13, 1  ;;  %s1728_s19 = smov (!%p138_p2), 1  }
   0x6   : > { %141 = sbr.rel (%p138_p2) target bundleno = 972 (0x3cc), region = 32  ;;  %s1731_s20 = smov (!%p138_p2), 124  }
   0x7   : > { %s1732_s21 = smov (!%p138_p2), 16   ;;  %s1733_s22 = smov (!%p138_p2), 36  }
   0x8   : > { %s1734_s23 = smov (!%p138_p2), 52   ;;  %s1735_s24 = smov (!%p138_p2), 32  }
   0x9   : > { %s1736_s25 = smov (!%p138_p2), 88   ;;  %s1737_s26 = smov (!%p138_p2), 72  }
   0xa   : > { %s1738_s27 = smov (!%p138_p2), 34   ;;  %s1739_s28 = smov (!%p138_p2), 68  }
   0xb   : > { %vm171_vm0 = vcmask 146432   ;;  %vm174_vm1 = vcmask 143360   ;;  %v1727_v0 = vmov 0.0   ;;  %s2065_s13 = smov (!%p1802_p3, %s1593_s13), 1  ;;  %vm225_vm2 = vcmask 138248   ;;  %s1740_s29 = smov 14  }
   0xc   : > { %179 = vst.msk [vmem:[#allocation2 + $0x30] sm:$0xff] %vm171_vm0, %v1727_v0  ;;  %180 = vst.msk [vmem:[#allocation2 + $0x38] sm:$0xff] %vm171_vm0, %v1727_v0  ;;  %1633 = vmatprep.subr.mxu1 %v1727_v0  ;;  %780 = vmatprep.mubr.f32.mxu0 %v1727_v0  ;;  %s1625_s15 = sshll.u32 %s2065_s13, 6  ;;  %v1729_v17 = vmov 1983009808   ;;  %v251_v19 = vlaneseq  ;;  %s1741_s30 = smov 126  }
   0xd   : > { %172 = vst.msk [vmem:[#allocation2] sm:$0xff] %vm171_vm0, %v1727_v0  ;;  %173 = vst.msk [vmem:[#allocation2 + $0x8] sm:$0xff] %vm171_vm0, %v1727_v0  ;;  %s165_s18 = scalar_lea.vmem %s2059_s0, %s1625_s15  ;;  %v249_v18 = vunpack.c.l.s4 %v1729_v17  ;;  %v1730_v22 = vmov 1934713408   ;;  %s1742_s4 = smov 54   ;;  %vm533_vm3 = vcmask 130048  }
   0xe   : > { %176 = vst.msk [vmem:[#allocation2 + $0x18] sm:$0xff] %vm171_vm0, %v1727_v0  ;;  %177 = vst.msk [vmem:[#allocation2 + $0x20] sm:$0xff] %vm171_vm0, %v1727_v0  ;;  %v189_v1 = vld [vmem:[%s165_s18 + $0x20] sm:$0xff]  ;;  %v191_v3 = vld [vmem:[%s165_s18 + $0x30] sm:$0xff]  ;;  %v252_v21 = vshrl.u32 %v251_v19, 7  ;;  %v281_v23 = vunpack.c.l.s4 %v1730_v22  ;;  %s1743_s5 = smov 18  }
   0xf   : > { %182 = vst.msk [vmem:[#allocation2 + $0x48] sm:$0xff] %vm171_vm0, %v1727_v0  ;;  %183 = vst.msk [vmem:[#allocation2 + $0x50] sm:$0xff] %vm171_vm0, %v1727_v0  ;;  %v185_v2 = vld [vmem:[%s165_s18] sm:$0xff]  ;;  %209 = vrot.lane.b32.xlu1 %v189_v1, %s1728_s19  ;;  %v187_v4 = vld [vmem:[%s165_s18 + $0x10] sm:$0xff]  ;;  %v250_v20 = vunpack.c.0.s8 %v249_v18  ;;  %s1744_s6 = smov 50   ;;  %s1745_s7 = smov 70  }
  0x10   : > { %178 = vst.msk [vmem:[#allocation2 + $0x28] sm:$0x1f] %vm174_vm1, %v1727_v0  ;;  %175 = vst.msk [vmem:[#allocation2 + $0x10] sm:$0x1f] %vm174_vm1, %v1727_v0  ;;  %201 = vrot.lane.b32.xlu0 %v185_v2, %s1728_s19  ;;  %v188_v5 = vld [vmem:[%s165_s18 + $0x18] sm:$0xff]  ;;  %v186_v6 = vld [vmem:[%s165_s18 + $0x8] sm:$0xff]  ;;  %v282_v28 = vunpack.c.0.s8 %v281_v23 }
  0x11   : > { %181 = vst.msk [vmem:[#allocation2 + $0x40] sm:$0x1f] %vm174_vm1, %v1727_v0  ;;  %184 = vst.msk [vmem:[#allocation2 + $0x58] sm:$0x1f] %vm174_vm1, %v1727_v0  ;;  %v192_v7 = vld [vmem:[%s165_s18 + $0x38] sm:$0xff]  ;;  %v190_v8 = vld [vmem:[%s165_s18 + $0x28] sm:$0xff]  ;;  %v1844_v26 = vsub.s32 %v250_v20, %v252_v21 }
  0x12   : > { %v1852_v40 = vsub.s32 %v282_v28, %v252_v21  ;;  %s1746_s8 = smov 90   ;;  %s1747_s9 = smov 106   ;;  %vm535_vm4 = vcmask 277504   ;;  %vm521_vm5 = vcmask 293888   ;;  %vm547_vm6 = vcmask 113664  }
  0x13   : > { %213 = vrot.lane.b32.xlu1 %v191_v3, %s1728_s19  ;;  %s1748_s10 = smov 86   ;;  %s1749_s11 = smov 108   ;;  %vm537_vm7 = vcmask 424960   ;;  %vm539_vm8 = vcmask 572416   ;;  %vm523_vm9 = vcmask 441344   ;;  %vm549_vm10 = vcmask 261120  }
  0x14   : > { %205 = vrot.lane.b32.xlu0 %v187_v4, %s1728_s19  ;;  %s1750_s14 = smov 104   ;;  %vm551_vm11 = vcmask 408576   ;;  %vm541_vm12 = vcmask 719872   ;;  %vm525_vm13 = vcmask 588800   ;;  %vm543_vm14 = vcmask 867328   ;;  %s1751_s15 = smov 92  }
  0x15   : > { %vm545_vm15 = vcmask 1014784   ;;  %vm527_vm1 = vcmask 736256   ;;  %s1752_s16 = smov 109   ;;  %s1753_s17 = smov 91  }
  0x16   : > { %s1754_s18 = smov 110  }
  0x17   : > { %207 = vrot.lane.b32.xlu1 %v188_v5, %s1728_s19 }
  0x18   : > { %203 = vrot.lane.b32.xlu0 %v186_v6, %s1728_s19 }
  0x1b   : > { %215 = vrot.lane.b32.xlu1 %v192_v7, %s1728_s19 }
  0x1c   : > { %211 = vrot.lane.b32.xlu0 %v190_v8, %s1728_s19  ;;  %s1755_s19 = smov 127  }
  0x81   : > { %v210_v9 = vpop.permute.xlu1 %209 }
  0x82   : > { %v202_v10 = vpop.permute.xlu0 %201  ;;  %230 = vst.msk [vmem:[#allocation2 + $0x31] sm:$0xff] %vm225_vm2, %v210_v9 }
  0x83   : > { %226 = vst.msk [vmem:[#allocation2 + $0x1] sm:$0xff] %vm225_vm2, %v202_v10  ;;  %v1717_v10 = vld [vmem:[#allocation2 + $0x14] ss:$48 sps:$4 sm:$0x11]  }
  0x85   : > { %v214_v11 = vpop.permute.xlu1 %213 }
  0x86   : > { %v206_v12 = vpop.permute.xlu0 %205  ;;  %232 = vst.msk [vmem:[#allocation2 + $0x49] sm:$0xff] %vm225_vm2, %v214_v11  ;;  %v1718_v11 = vld [vmem:[#allocation2 + $0x2c] ss:$48 sps:$4 sm:$0x11]  }
  0x87   : > { %228 = vst.msk [vmem:[#allocation2 + $0x19] sm:$0xff] %vm225_vm2, %v206_v12 }
  0x89   : > { %v208_v13 = vpop.permute.xlu1 %207 }
  0x8a   : > { %v204_v14 = vpop.permute.xlu0 %203  ;;  %229 = vst.msk [vmem:[#allocation2 + $0x21] sm:$0xff] %vm225_vm2, %v208_v13  ;;  %v1707_v25 = vld [vmem:[#allocation2] ss:$48 sps:$4 sm:$0xff]   ;;  %v1715_v50 = vld [vmem:[#allocation2 + $0x4] ss:$48 sps:$4 sm:$0xff]  }
  0x8b   : > { %227 = vst.msk [vmem:[#allocation2 + $0x9] sm:$0xff] %vm225_vm2, %v204_v14  ;;  %v254_v39 = vrot.slane %v1707_v25, %v1844_v26  ;;  %v261_v56 = vrot.slane %v1715_v50, %v1844_v26  ;;  %v397_v14 = vrot.slane %v1717_v10, %v1844_v26 }
  0x8d   : > { %v216_v15 = vpop.permute.xlu1 %215 }
  0x8e   : > { %v212_v16 = vpop.permute.xlu0 %211  ;;  %233 = vst.msk [vmem:[#allocation2 + $0x51] sm:$0xff] %vm225_vm2, %v216_v15  ;;  %v1709_v24 = vld [vmem:[#allocation2 + $0x18] ss:$48 sps:$4 sm:$0xff]   ;;  %v1716_v45 = vld [vmem:[#allocation2 + $0x1c] ss:$48 sps:$4 sm:$0xff]   ;;  %v413_v15 = vrot.slane %v1718_v11, %v1844_v26 }
  0x8f   : > { %231 = vst.msk [vmem:[#allocation2 + $0x39] sm:$0xff] %vm225_vm2, %v212_v16  ;;  %v270_v33 = vrot.slane %v1709_v24, %v1844_v26  ;;  %v277_v51 = vrot.slane %v1716_v45, %v1844_v26  ;;  %vm555_vm2 = vcmask 703488  }
  0x90   : > { %v430_v18 = vcombine.low %v397_v14, %v413_v15 }
  0x91   : > { %v279_v43 = vcombine.high %v254_v39, %v270_v33  ;;  %v294_v59 = vcombine.low %v261_v56, %v277_v51  ;;  %v295_v63 = vcombine.high %v261_v56, %v277_v51  ;;  %v278_v4 = vcombine.low %v254_v39, %v270_v33 }
  0x92   : > { %v439_v19 = vrot.slane %v430_v18, %v1852_v40 }
  0x93   : > { %v293_v52 = vrot.slane %v279_v43, %v1852_v40  ;;  %v302_v60 = vrot.slane %v294_v59, %v1852_v40  ;;  %v309_v3 = vrot.slane %v295_v63, %v1852_v40  ;;  %v286_v7 = vrot.slane %v278_v4, %v1852_v40 }
  0x95   : > { %v1703_v29 = vld [vmem:[#allocation2 + $0x24] ss:$48 sps:$4 sm:$0xff]   ;;  %v1706_v31 = vld [vmem:[#allocation2 + $0x20] ss:$48 sps:$4 sm:$0xff]   ;;  %v1713_v38 = vld [vmem:[#allocation2 + $0x28] ss:$48 sps:$4 sm:$0xff]   ;;  %v313_v5 = vcombine.high %v309_v3, %v1727_v0  ;;  %v311_v6 = vcombine.high %v293_v52, %v1727_v0  ;;  %v310_v8 = vcombine.high %v286_v7, %v1727_v0  ;;  %v312_v13 = vcombine.high %v302_v60, %v1727_v0 }
  0x96   : > { %v1701_v27 = vld [vmem:[#allocation2 + $0xc] ss:$48 sps:$4 sm:$0xff]   ;;  %v1705_v30 = vld [vmem:[#allocation2 + $0x8] ss:$48 sps:$4 sm:$0xff]   ;;  %v1711_v34 = vld [vmem:[#allocation2 + $0x10] ss:$48 sps:$4 sm:$0xff]   ;;  %v345_v35 = vrot.slane %v1703_v29, %v1844_v26  ;;  %v338_v37 = vrot.slane %v1706_v31, %v1844_v26  ;;  %v406_v49 = vrot.slane %v1713_v38, %v1844_v26 }
  0x97   : > { %v329_v32 = vrot.slane %v1701_v27, %v1844_v26  ;;  %v322_v36 = vrot.slane %v1705_v30, %v1844_v26  ;;  %v390_v44 = vrot.slane %v1711_v34, %v1844_v26 }
  0x99   : > { %v363_v41 = vcombine.high %v329_v32, %v345_v35  ;;  %v346_v42 = vcombine.low %v322_v36, %v338_v37  ;;  %v347_v48 = vcombine.high %v322_v36, %v338_v37  ;;  %v414_v54 = vcombine.low %v390_v44, %v406_v49 }
  0x9a   : > { %v362_v55 = vcombine.low %v329_v32, %v345_v35  ;;  %v415_v62 = vcombine.high %v390_v44, %v406_v49 }
  0x9b   : > { %v377_v46 = vrot.slane %v363_v41, %v1852_v40  ;;  %v354_v47 = vrot.slane %v346_v42, %v1852_v40  ;;  %v361_v53 = vrot.slane %v347_v48, %v1852_v40  ;;  %v422_v57 = vrot.slane %v414_v54, %v1852_v40 }
  0x9c   : > { %v370_v58 = vrot.slane %v362_v55, %v1852_v40  ;;  %v429_v1 = vrot.slane %v415_v62, %v1852_v40 }
  0x9d   : > { %493 = vrot.lane.b32.xlu0 %v377_v46, %s1731_s20  ;;  %469 = vrot.lane.b32.xlu1 %v354_v47, %s1732_s21  ;;  %v378_v61 = vcombine.high %v354_v47, %v1727_v0  ;;  %v381_v2 = vcombine.high %v377_v46, %v1727_v0  ;;  %v431_v9 = vcombine.high %v422_v57, %v1727_v0 }
  0x9e   : > { %v379_v12 = vcombine.high %v361_v53, %v1727_v0  ;;  %v380_v16 = vcombine.high %v370_v58, %v1727_v0  ;;  %v432_v17 = vcombine.high %v429_v1, %v1727_v0 }
  0xa1   : > { %445 = vrot.lane.b32.xlu0 %v293_v52, %s1733_s22  ;;  %477 = vrot.lane.b32.xlu1 %v361_v53, %s1734_s23  ;;  %s1757_s23 = smov 4  }
  0xa5   : > { %501 = vrot.lane.b32.xlu0 %v422_v57, %s1735_s24  ;;  %485 = vrot.lane.b32.xlu1 %v370_v58, %s1736_s25  ;;  %s1758_s25 = smov 2  }
  0xa9   : > { %453 = vrot.lane.b32.xlu0 %v302_v60, %s1737_s26  ;;  %473 = vrot.lane.b32.xlu1 %v378_v61, %s1738_s27  ;;  %s1759_s26 = smov 74   ;;  %s1760_s27 = smov 56  }
  0xad   : > { %509 = vrot.lane.b32.xlu0 %v429_v1, %s1739_s28  ;;  %497 = vrot.lane.b32.xlu1 %v381_v2, %s1740_s29  ;;  %s1761_s28 = smov 38   ;;  %s1762_s29 = smov 20  }
  0xb1   : > { %465 = vrot.lane.b32.xlu0 %v313_v5, %s1741_s30  ;;  %449 = vrot.lane.b32.xlu1 %v311_v6, %s1742_s4  ;;  %s1764_s4 = smov 112  }
  0xb5   : > { %441 = vrot.lane.b32.xlu0 %v310_v8, %s1743_s5  ;;  %505 = vrot.lane.b32.xlu1 %v431_v9, %s1744_s6  ;;  %s1765_s5 = smov 58   ;;  %s1766_s6 = smov 76  }
  0xb9   : > { %481 = vrot.lane.b32.xlu0 %v379_v12, %s1745_s7  ;;  %457 = vrot.lane.b32.xlu1 %v312_v13, %s1746_s8  ;;  %s1767_s7 = smov 40  }
  0xbd   : > { %489 = vrot.lane.b32.xlu0 %v380_v16, %s1747_s9  ;;  %513 = vrot.lane.b32.xlu1 %v432_v17, %s1748_s10  ;;  %s1769_s9 = smov 114   ;;  %s1770_s10 = smov 48  }
  0xc1   : > { %461 = vrot.lane.b32.xlu0 %v309_v3, %s1749_s11  ;;  %517 = vrot.lane.b32.xlu1 %v439_v19, %s1750_s14  ;;  %s1626_s14 = sshll.u32 %s2065_s13, 4 }
 0x10f   : > { %v494_v20 = vpop.permute.xlu0 %493  ;;  %v470_v21 = vpop.permute.xlu1 %469 }
 0x113   : > { %v446_v22 = vpop.permute.xlu0 %445  ;;  %v478_v23 = vpop.permute.xlu1 %477 }
 0x117   : > { %v502_v24 = vpop.permute.xlu0 %501  ;;  %v486_v25 = vpop.permute.xlu1 %485 }
 0x11b   : > { %v454_v27 = vpop.permute.xlu0 %453  ;;  %v474_v28 = vpop.permute.xlu1 %473 }
 0x11f   : > { %v510_v29 = vpop.permute.xlu0 %509  ;;  %v498_v30 = vpop.permute.xlu1 %497 }
 0x120   : > { %v548_v39 = vsel %vm547_vm6, %v494_v20, %v498_v30  ;;  %vm557_vm6 = vcmask 850944  }
 0x121   : > { %v550_v46 = vsel %vm549_vm10, %v548_v39, %v502_v24 }
 0x123   : > { %v466_v31 = vpop.permute.xlu0 %465  ;;  %v450_v32 = vpop.permute.xlu1 %449 }
 0x124   : > { %v534_v33 = vsel %vm533_vm3, %v466_v31, %v470_v21 }
 0x125   : > { %v536_v36 = vsel %vm535_vm4, %v534_v33, %v474_v28  ;;  %vm529_vm4 = vcmask 883712  }
 0x126   : > { %v538_v42 = vsel %vm537_vm7, %v536_v36, %v478_v23  ;;  %vm531_vm7 = vcmask 1031168  }
 0x127   : > { %v442_v34 = vpop.permute.xlu0 %441  ;;  %v506_v35 = vpop.permute.xlu1 %505 }
 0x128   : > { %v520_v37 = vsel %vm171_vm0, %v286_v7, %v442_v34  ;;  %v552_v47 = vsel %vm551_vm11, %v550_v46, %v506_v35  ;;  %vm553_vm0 = vcmask 556032   ;;  %vm649_vm11 = vcmask 752640  }
 0x129   : > { %v522_v38 = vsel %vm521_vm5, %v520_v37, %v446_v22  ;;  %v554_v54 = vsel %vm553_vm0, %v552_v47, %v510_v29  ;;  %vm605_vm0 = vcmask 900096  }
 0x12a   : > { %v524_v45 = vsel %vm523_vm9, %v522_v38, %v450_v32  ;;  %vm1756_vm9 = vmmov 0  }
 0x12b   : > { %v482_v41 = vpop.permute.xlu0 %481  ;;  %v458_v43 = vpop.permute.xlu1 %457  ;;  %v526_v51 = vsel %vm525_vm13, %v524_v45, %v454_v27  ;;  %1643 = vmatprep.mubr.msk.f32.mxu1 %vm1756_vm9, %v1727_v0  ;;  %vm620_vm13 = vcmask 891904   ;;  %vm1523_vm9 = vcmask 916480  }
 0x12c   : > { %v540_v44 = vsel %vm539_vm8, %v538_v42, %v482_v41  ;;  %vm561_vm8 = vcmask 551936   ;;  %v528_v55 = vsel %vm527_vm1, %v526_v51, %v458_v43 }
 0x12d   : > { %v542_v49 = vsel %vm541_vm12, %v540_v44, %v486_v25  ;;  %vm706_vm12 = vcmask 1043456  }
 0x12f   : > { %v490_v48 = vpop.permute.xlu0 %489  ;;  %v514_v50 = vpop.permute.xlu1 %513 }
 0x130   : > { %v544_v52 = vsel %vm543_vm14, %v542_v49, %v490_v48  ;;  %v556_v56 = vsel %vm555_vm2, %v554_v54, %v514_v50  ;;  %vm583_vm14 = vcmask 556036   ;;  %vm907_vm2 = vcmask 31744  }
 0x131   : > { %v546_v53 = vsel %vm545_vm15, %v544_v52, %v494_v20  ;;  %vm664_vm15 = vcmask 744448  }
 0x132   : > { %560 = vst [vmem:[#allocation3 + $0x8] sm:$0xf] %v546_v53  ;;  %v567_v63 = vrot.slane %v546_v53, 4 }
 0x133   : > { %v462_v57 = vpop.permute.xlu0 %461  ;;  %v518_v58 = vpop.permute.xlu1 %517 }
 0x134   : > { %v530_v59 = vsel %vm529_vm4, %v528_v55, %v462_v57  ;;  %v558_v60 = vsel %vm557_vm6, %v556_v56, %v518_v58  ;;  %v687_v55 = vld [vmem:[%s2060_s1] sm:$0xff]  ;;  %vm1517_vm6 = vcmask 523264  }
 0x135   : > { %v532_v61 = vsel %vm531_vm7, %v530_v59, %v466_v31  ;;  %647 = vrot.lane.b32.xlu0 %v558_v60, %s1751_s15  ;;  %677 = vrot.lane.b32.xlu1 %v558_v60, %s1746_s8  ;;  %562 = vst.msk [vmem:[#allocation3 + $0x10] sm:$0xf] %vm561_vm8, %v558_v60  ;;  %v568_v62 = vrot.slane %v558_v60, 4 }
 0x136   : > { %559 = vst [vmem:[#allocation3] sm:$0xf] %v532_v61  ;;  %v566_v1 = vrot.slane %v532_v61, 4 }
 0x139   : > { %618 = vrot.lane.b32.xlu0 %v558_v60, %s1752_s16  ;;  %645 = vrot.lane.b32.xlu1 %v546_v53, %s1751_s15 }
 0x13d   : > { %589 = vrot.lane.b32.xlu0 %v558_v60, %s1741_s30  ;;  %643 = vrot.lane.b32.xlu1 %v532_v61, %s1751_s15 }
 0x141   : > { %675 = vrot.lane.b32.xlu0 %v546_v53, %s1746_s8  ;;  %616 = vrot.lane.b32.xlu1 %v546_v53, %s1752_s16 }
 0x145   : > { %673 = vrot.lane.b32.xlu0 %v532_v61, %s1746_s8  ;;  %614 = vrot.lane.b32.xlu1 %v532_v61, %s1752_s16  ;;  %s1768_s8 = smov 22  }
 0x149   : > { %587 = vrot.lane.b32.xlu1 %v546_v53, %s1741_s30  ;;  %662 = vrot.lane.b32.xlu0 %v568_v62, %s1753_s17 }
 0x14d   : > { %585 = vrot.lane.b32.xlu1 %v532_v61, %s1741_s30  ;;  %633 = vrot.lane.b32.xlu0 %v568_v62, %s1749_s11  ;;  %s1763_s30 = smov 94  }
 0x151   : > { %660 = vrot.lane.b32.xlu1 %v567_v63, %s1753_s17  ;;  %603 = vrot.lane.b32.xlu0 %v568_v62, %s1754_s18 }
 0x155   : > { %631 = vrot.lane.b32.xlu1 %v567_v63, %s1749_s11  ;;  %658 = vrot.lane.b32.xlu0 %v566_v1, %s1753_s17 }
 0x159   : > { %601 = vrot.lane.b32.xlu1 %v567_v63, %s1754_s18  ;;  %629 = vrot.lane.b32.xlu0 %v566_v1, %s1749_s11  ;;  %s1772_s11 = smov 80  }
 0x15d   : > { %571 = vrot.lane.b32.xlu1 %v567_v63, %s1755_s19  ;;  %599 = vrot.lane.b32.xlu0 %v566_v1, %s1754_s18 }
 0x161   : > { %569 = vrot.lane.b32.xlu1 %v566_v1, %s1755_s19  ;;  %573 = vrot.lane.b32.xlu0 %v568_v62, %s1755_s19  ;;  %s170_s19 = scalar_lea.vmem %s2062_s3, %s1626_s14 }
 0x1a7   : > { %v648_v2 = vpop.permute.xlu0 %647  ;;  %v678_v3 = vpop.permute.xlu1 %677 }
 0x1a8   : > { %657 = vst.msk [vmem:[#allocation3 + $0x58] sm:$0xf] %vm561_vm8, %v648_v2  ;;  %686 = vst.msk [vmem:[#allocation3 + $0x70] sm:$0xf] %vm561_vm8, %v678_v3 }
 0x1ab   : > { %v619_v4 = vpop.permute.xlu0 %618  ;;  %v646_v5 = vpop.permute.xlu1 %645 }
 0x1ac   : > { %628 = vst.msk [vmem:[#allocation3 + $0x40] sm:$0xf] %vm561_vm8, %v619_v4  ;;  %v651_v6 = vsel %vm649_vm11, %v646_v5, %v648_v2 }
 0x1ad   : > { %656 = vst [vmem:[#allocation3 + $0x50] sm:$0xf] %v651_v6 }
 0x1af   : > { %v590_v7 = vpop.permute.xlu0 %589  ;;  %v644_v8 = vpop.permute.xlu1 %643  ;;  %v702_v9 = vld [vmem:[#allocation3 + $0x70] sm:$0xf] }
 0x1b0   : > { %598 = vst.msk [vmem:[#allocation3 + $0x28] sm:$0xf] %vm561_vm8, %v590_v7  ;;  %v650_v10 = vsel %vm649_vm11, %v644_v8, %v646_v5  ;;  %1634 = vmatpush3.msk.msra.mxu1 %vm706_vm12, %v702_v9  ;;  %vm1521_vm8 = vcmask 785408  }
 0x1b1   : > { %655 = vst [vmem:[#allocation3 + $0x48] sm:$0xf] %v650_v10  ;;  %1635 = vmatprep.subr.mxu1 %v1727_v0 }
 0x1b3   : > { %v676_v11 = vpop.permute.xlu0 %675  ;;  %v617_v12 = vpop.permute.xlu1 %616 }
 0x1b4   : > { %v680_v13 = vsel %vm527_vm1, %v676_v11, %v678_v3  ;;  %v622_v14 = vsel %vm620_vm13, %v617_v12, %v619_v4 }
 0x1b5   : > { %685 = vst [vmem:[#allocation3 + $0x68] sm:$0xf] %v680_v13  ;;  %627 = vst [vmem:[#allocation3 + $0x38] sm:$0xf] %v622_v14 }
 0x1b7   : > { %v674_v15 = vpop.permute.xlu0 %673  ;;  %v615_v16 = vpop.permute.xlu1 %614 }
 0x1b8   : > { %v679_v17 = vsel %vm527_vm1, %v674_v15, %v676_v11  ;;  %v621_v18 = vsel %vm620_vm13, %v615_v16, %v617_v12  ;;  %vm575_vm1 = vcmask 1039360  }
 0x1b9   : > { %684 = vst [vmem:[#allocation3 + $0x60] sm:$0xf] %v679_v17  ;;  %626 = vst [vmem:[#allocation3 + $0x30] sm:$0xf] %v621_v18 }
 0x1bb   : > { %v588_v19 = vpop.permute.xlu1 %587  ;;  %v663_v20 = vpop.permute.xlu0 %662 }
 0x1bc   : > { %v592_v21 = vsel %vm531_vm7, %v588_v19, %v590_v7  ;;  %672 = vst.msk [vmem:[#allocation3 + $0x58] sm:$0xf0] %vm583_vm14, %v663_v20  ;;  %v701_v22 = vld [vmem:[#allocation3 + $0x68] sm:$0xf] }
 0x1bd   : > { %597 = vst [vmem:[#allocation3 + $0x20] sm:$0xf] %v592_v21  ;;  %1602 = vmatprep.subr.msk.mxu0 %vm706_vm12, %v701_v22 }
 0x1bf   : > { %v586_v23 = vpop.permute.xlu1 %585  ;;  %v634_v24 = vpop.permute.xlu0 %633 }
 0x1c0   : > { %v591_v25 = vsel %vm531_vm7, %v586_v23, %v588_v19  ;;  %642 = vst.msk [vmem:[#allocation3 + $0x40] sm:$0xf0] %vm583_vm14, %v634_v24  ;;  %v700_v27 = vld [vmem:[#allocation3 + $0x60] sm:$0xf]  ;;  %vm1519_vm7 = vcmask 654336  }
 0x1c1   : > { %596 = vst [vmem:[#allocation3 + $0x18] sm:$0xf] %v591_v25  ;;  %1603 = vmatpush1.msk.msra.mxu0 %vm706_vm12, %v700_v27 }
 0x1c3   : > { %v661_v28 = vpop.permute.xlu1 %660  ;;  %v604_v29 = vpop.permute.xlu0 %603  ;;  %v699_v30 = vld [vmem:[#allocation3 + $0x58] sm:$0xff] }
 0x1c4   : > { %v666_v31 = vsel %vm664_vm15, %v661_v28, %v663_v20  ;;  %613 = vst.msk [vmem:[#allocation3 + $0x28] sm:$0xf0] %vm583_vm14, %v604_v29  ;;  %1636 = vmatpush3.msra.mxu1 %v699_v30 }
 0x1c5   : > { %671 = vst [vmem:[#allocation3 + $0x50] sm:$0xf0] %v666_v31  ;;  %1637 = vmatprep.subr.mxu1 %v1727_v0 }
 0x1c7   : > { %v632_v32 = vpop.permute.xlu1 %631  ;;  %v659_v33 = vpop.permute.xlu0 %658  ;;  %v696_v34 = vld [vmem:[#allocation3 + $0x40] sm:$0xff] }
 0x1c8   : > { %v636_v35 = vsel %vm529_vm4, %v632_v32, %v634_v24  ;;  %v665_v36 = vsel %vm664_vm15, %v659_v33, %v661_v28  ;;  %1638 = vmatpush3.msra.mxu1 %v696_v34 }
 0x1c9   : > { %641 = vst [vmem:[#allocation3 + $0x38] sm:$0xf0] %v636_v35  ;;  %670 = vst [vmem:[#allocation3 + $0x48] sm:$0xf0] %v665_v36  ;;  %1639 = vmatprep.subr.mxu1 %v1727_v0 }
 0x1cb   : > { %v602_v37 = vpop.permute.xlu1 %601  ;;  %v630_v38 = vpop.permute.xlu0 %629  ;;  %v693_v39 = vld [vmem:[#allocation3 + $0x28] sm:$0xff] }
 0x1cc   : > { %v607_v41 = vsel %vm605_vm0, %v602_v37, %v604_v29  ;;  %v635_v42 = vsel %vm529_vm4, %v630_v38, %v632_v32  ;;  %1640 = vmatpush3.msra.mxu1 %v693_v39  ;;  %v698_v43 = vld [vmem:[#allocation3 + $0x50] sm:$0xff]  ;;  %vm1515_vm4 = vcmask 392192  }
 0x1cd   : > { %612 = vst [vmem:[#allocation3 + $0x20] sm:$0xf0] %v607_v41  ;;  %640 = vst [vmem:[#allocation3 + $0x30] sm:$0xf0] %v635_v42  ;;  %740 = vmatprep.subr.mxu0 %v698_v43  ;;  %1641 = vmatprep.subr.mxu1 %v1727_v0 }
 0x1cf   : > { %v572_v44 = vpop.permute.xlu1 %571  ;;  %v600_v45 = vpop.permute.xlu0 %599 }
 0x1d0   : > { %v606_v46 = vsel %vm605_vm0, %v600_v45, %v602_v37  ;;  %v697_v47 = vld [vmem:[#allocation3 + $0x48] sm:$0xff]  ;;  %v695_v48 = vld [vmem:[#allocation3 + $0x38] sm:$0xff] }
 0x1d1   : > { %611 = vst [vmem:[#allocation3 + $0x18] sm:$0xf0] %v606_v46  ;;  %741 = vmatpush1.msra.mxu0 %v697_v47 }
 0x1d2   : > { %742 = vmatprep.subr.mxu0 %v695_v48 }
 0x1d3   : > { %v570_v49 = vpop.permute.xlu1 %569  ;;  %v574_v50 = vpop.permute.xlu0 %573 }
 0x1d4   : > { %v576_v51 = vsel %vm575_vm1, %v570_v49, %v572_v44  ;;  %v577_v52 = vsel %vm575_vm1, %v572_v44, %v574_v50  ;;  %584 = vst.msk [vmem:[#allocation3 + $0x10] sm:$0xf0] %vm583_vm14, %v574_v50  ;;  %v694_v53 = vld [vmem:[#allocation3 + $0x30] sm:$0xff]  ;;  %v692_v54 = vld [vmem:[#allocation3 + $0x20] sm:$0xff] }
 0x1d5   : > { %581 = vst [vmem:[#allocation3] sm:$0xf0] %v576_v51  ;;  %582 = vst [vmem:[#allocation3 + $0x8] sm:$0xf0] %v577_v52  ;;  %743 = vmatpush1.msra.mxu0 %v694_v53 }
 0x1d6   : > { %744 = vmatprep.subr.mxu0 %v692_v54 }
 0x1d8   : > { %v691_v0 = vld [vmem:[#allocation3 + $0x18] sm:$0xff] }
 0x1d9   : > { %745 = vmatpush1.msra.mxu0 %v691_v0 }
 0x1db   : > { %v690_v56 = vld [vmem:[#allocation3 + $0x10] sm:$0xff] }
 0x1dc   : > { %1642 = vmatpush3.msra.mxu1 %v690_v56  ;;  %v689_v57 = vld [vmem:[#allocation3 + $0x8] sm:$0xff]  ;;  %v688_v58 = vld [vmem:[#allocation3] sm:$0xff] }
 0x1dd   : > { %746 = vmatprep.subr.mxu0 %v689_v57  ;;  %1644 = vmatmul.mubr.msk.f32.vlgmr.msra.gmra.mxu1 %vm521_vm5, %v687_v55 }
 0x1de   : > { %747 = vmatpush1.msra.mxu0 %v688_v58 }
 0x1df   : > { %1604 = vmatmul.mubr.msk.f32.vlgmr.msra.gmra.mxu0 %vm521_vm5, %v687_v55  ;;  %vm881_vm5 = vcmask 15360  }
 0x29d   : > { %v853_v59 = vpop.f32.mrf.mxu1 }
 0x29e   : > { %905 = vrot.lane.b32.xlu0 %v853_v59, %s1757_s23 }
 0x29f   : > { %v782_v60 = vpop.f32.mrf.mxu0  ;;  %v1645_v61 = vpop.f32.mrf.mxu1 }
 0x2a0   : > { %861 = vrot.lane.b32.xlu1 %v782_v60, %s1751_s15 }
 0x2a1   : > { %v784_v62 = vpop.f32.mrf.mxu0 }
 0x2a2   : > { %858 = vrot.lane.b32.xlu0 %v782_v60, %s1754_s18 }
 0x2a4   : > { %877 = vrot.lane.b32.xlu1 %v782_v60, %s1758_s25 }
 0x2a6   : > { %864 = vrot.lane.b32.xlu0 %v782_v60, %s1759_s26 }
 0x2a8   : > { %867 = vrot.lane.b32.xlu1 %v782_v60, %s1760_s27 }
 0x2aa   : > { %870 = vrot.lane.b32.xlu0 %v782_v60, %s1761_s28 }
 0x2ac   : > { %873 = vrot.lane.b32.xlu1 %v782_v60, %s1762_s29 }
 0x2ae   : > { %887 = vrot.lane.b32.xlu0 %v784_v62, %s1763_s30 }
 0x2b0   : > { %884 = vrot.lane.b32.xlu1 %v784_v62, %s1764_s4 }
 0x2b2   : > { %893 = vrot.lane.b32.xlu0 %v784_v62, %s1765_s5 }
 0x2b4   : > { %890 = vrot.lane.b32.xlu1 %v784_v62, %s1766_s6 }
 0x2b6   : > { %879 = vrot.lane.b32.xlu0 %v784_v62, %s1758_s25 }
 0x2b8   : > { %903 = vrot.lane.b32.xlu1 %v784_v62, %s1757_s23 }
 0x2ba   : > { %896 = vrot.lane.b32.xlu0 %v784_v62, %s1767_s7 }
 0x2bc   : > { %899 = vrot.lane.b32.xlu1 %v784_v62, %s1768_s8 }
 0x2be   : > { %910 = vrot.lane.b32.xlu0 %v853_v59, %s1769_s9 }
 0x310   : > { %v1939_v63 = vpop.permute.xlu0 %905 }
 0x312   : > { %v862_v1 = vpop.permute.xlu1 %861 }
 0x313   : > { %v913_v4 = vcombine.low %v782_v60, %v862_v1  ;;  %v914_v5 = vcombine.high %v782_v60, %v862_v1 }
 0x314   : > { %v859_v2 = vpop.permute.xlu0 %858 }
 0x315   : > { %v921_v10 = vrot.slane %v913_v4, %v1844_v26  ;;  %v928_v11 = vrot.slane %v914_v5, %v1844_v26 }
 0x316   : > { %v878_v3 = vpop.permute.xlu1 %877 }
 0x318   : > { %v865_v6 = vpop.permute.xlu0 %864 }
 0x319   : > { %v929_v7 = vcombine.low %v859_v2, %v865_v6  ;;  %v930_v8 = vcombine.high %v859_v2, %v865_v6 }
 0x31a   : > { %v868_v9 = vpop.permute.xlu1 %867 }
 0x31b   : > { %v937_v12 = vrot.slane %v929_v7, %v1844_v26  ;;  %v944_v13 = vrot.slane %v930_v8, %v1844_v26 }
 0x31c   : > { %v871_v14 = vpop.permute.xlu0 %870 }
 0x31d   : > { %v977_v15 = vcombine.low %v921_v10, %v937_v12  ;;  %v978_v16 = vcombine.high %v921_v10, %v937_v12  ;;  %v993_v17 = vcombine.low %v928_v11, %v944_v13  ;;  %v994_v18 = vcombine.high %v928_v11, %v944_v13 }
 0x31e   : > { %v874_v19 = vpop.permute.xlu1 %873 }
 0x31f   : > { %v985_v20 = vrot.slane %v977_v15, %v1852_v40  ;;  %v992_v21 = vrot.slane %v978_v16, %v1852_v40  ;;  %v1001_v22 = vrot.slane %v993_v17, %v1852_v40  ;;  %v1008_v23 = vrot.slane %v994_v18, %v1852_v40 }
 0x320   : > { %v888_v24 = vpop.permute.xlu0 %887  ;;  %v945_v30 = vcombine.low %v868_v9, %v874_v19  ;;  %v946_v31 = vcombine.high %v868_v9, %v874_v19 }
 0x321   : > { %v1607_v25 = vcombine.low %v985_v20, %v992_v21  ;;  %v1609_v27 = vcombine.high %v985_v20, %v992_v21  ;;  %v1611_v28 = vcombine.low %v1001_v22, %v1008_v23  ;;  %v1613_v29 = vcombine.high %v1001_v22, %v1008_v23 }
 0x322   : > { %v885_v32 = vpop.permute.xlu1 %884  ;;  %v953_v43 = vrot.slane %v945_v30, %v1844_v26  ;;  %v960_v47 = vrot.slane %v946_v31, %v1844_v26 }
 0x323   : > { %v1193_v33 = vrot.slane %v1607_v25, %v1844_v26  ;;  %v1209_v34 = vrot.slane %v1609_v27, %v1844_v26  ;;  %v1225_v35 = vrot.slane %v1611_v28, %v1844_v26  ;;  %v1241_v36 = vrot.slane %v1613_v29, %v1844_v26 }
 0x324   : > { %v894_v37 = vpop.permute.xlu0 %893 }
 0x325   : > { %v1065_v38 = vcombine.low %v888_v24, %v894_v37  ;;  %v1066_v39 = vcombine.high %v888_v24, %v894_v37  ;;  %v1249_v41 = vcombine.low %v1193_v33, %v1209_v34  ;;  %v1281_v42 = vcombine.low %v1225_v35, %v1241_v36 }
 0x326   : > { %v891_v44 = vpop.permute.xlu1 %890  ;;  %v1250_v45 = vcombine.high %v1193_v33, %v1209_v34  ;;  %v1282_v46 = vcombine.high %v1225_v35, %v1241_v36 }
 0x327   : > { %v1073_v48 = vrot.slane %v1065_v38, %v1844_v26  ;;  %v1049_v49 = vcombine.low %v885_v32, %v891_v44  ;;  %v1050_v50 = vcombine.high %v885_v32, %v891_v44  ;;  %v1957_v52 = vrot.slane %v1249_v41, %v1852_v40 }
 0x328   : > { %v880_v51 = vpop.permute.xlu0 %879  ;;  %v1960_v53 = vrot.slane %v1281_v42, %v1852_v40  ;;  %v1264_v54 = vrot.slane %v1250_v45, %v1852_v40  ;;  %v1296_v0 = vrot.slane %v1282_v46, %v1852_v40  ;;  %v1080_v55 = vrot.slane %v1066_v39, %v1844_v26 }
 0x329   : > { %v1057_v56 = vrot.slane %v1049_v49, %v1844_v26  ;;  %v1064_v57 = vrot.slane %v1050_v50, %v1844_v26  ;;  %v882_v58 = vsel %vm881_vm5, %v878_v3, %v880_v51 }
 0x32a   : > { %v961_v59 = vcombine.low %v871_v14, %v882_v58  ;;  %v962_v60 = vcombine.high %v871_v14, %v882_v58  ;;  %v904_v61 = vpop.permute.xlu1 %903  ;;  %v1314_v62 = vcombine.high %v1957_v52, %v1960_v53  ;;  %v1315_v1 = vcombine.low %v1264_v54, %v1296_v0 }
 0x32b   : > { %v1113_v2 = vcombine.low %v1057_v56, %v1073_v48  ;;  %v1114_v4 = vcombine.high %v1057_v56, %v1073_v48  ;;  %v1129_v5 = vcombine.low %v1064_v57, %v1080_v55  ;;  %v1130_v6 = vcombine.high %v1064_v57, %v1080_v55 }
 0x32c   : > { %v969_v7 = vrot.slane %v961_v59, %v1844_v26  ;;  %v976_v8 = vrot.slane %v962_v60, %v1844_v26  ;;  %v908_v9 = vsel %vm907_vm2, %v904_v61, %v1939_v63  ;;  %1458 = vrot.lane.b32.xlu1 %v1314_v62, %s1732_s21  ;;  %v897_v3 = vpop.permute.xlu0 %896  ;;  %v1316_v10 = vcombine.high %v1264_v54, %v1296_v0 }
 0x32d   : > { %v1121_v11 = vrot.slane %v1113_v2, %v1852_v40  ;;  %v1128_v12 = vrot.slane %v1114_v4, %v1852_v40  ;;  %v1137_v13 = vrot.slane %v1129_v5, %v1852_v40  ;;  %v1144_v14 = vrot.slane %v1130_v6, %v1852_v40 }
 0x32e   : > { %v1009_v15 = vcombine.low %v953_v43, %v969_v7  ;;  %v1010_v16 = vcombine.high %v953_v43, %v969_v7  ;;  %v1025_v17 = vcombine.low %v960_v47, %v976_v8  ;;  %v1026_v18 = vcombine.high %v960_v47, %v976_v8  ;;  %v900_v27 = vpop.permute.xlu1 %899 }
 0x32f   : > { %v1615_v19 = vcombine.low %v1121_v11, %v1128_v12  ;;  %v1617_v20 = vcombine.high %v1121_v11, %v1128_v12  ;;  %v1619_v21 = vcombine.low %v1137_v13, %v1144_v14  ;;  %v1621_v63 = vcombine.high %v1137_v13, %v1144_v14 }
 0x330   : > { %v1017_v22 = vrot.slane %v1009_v15, %v1852_v40  ;;  %v1024_v23 = vrot.slane %v1010_v16, %v1852_v40  ;;  %v1033_v24 = vrot.slane %v1025_v17, %v1852_v40  ;;  %v1040_v25 = vrot.slane %v1026_v18, %v1852_v40  ;;  %1462 = vrot.lane.b32.xlu1 %v1315_v1, %s1735_s24  ;;  %v911_v28 = vpop.permute.xlu0 %910 }
 0x331   : > { %v1081_v29 = vcombine.low %v897_v3, %v908_v9  ;;  %v1082_v30 = vcombine.high %v897_v3, %v908_v9  ;;  %v1097_v31 = vcombine.low %v900_v27, %v911_v28  ;;  %v1098_v32 = vcombine.high %v900_v27, %v911_v28 }
 0x332   : > { %v1608_v33 = vcombine.low %v1017_v22, %v1024_v23  ;;  %v1610_v34 = vcombine.high %v1017_v22, %v1024_v23  ;;  %v1612_v35 = vcombine.low %v1033_v24, %v1040_v25  ;;  %v1614_v36 = vcombine.high %v1033_v24, %v1040_v25 }
 0x333   : > { %v1089_v37 = vrot.slane %v1081_v29, %v1844_v26  ;;  %v1096_v38 = vrot.slane %v1082_v30, %v1844_v26  ;;  %v1105_v39 = vrot.slane %v1097_v31, %v1844_v26  ;;  %v1112_v41 = vrot.slane %v1098_v32, %v1844_v26 }
 0x334   : > { %1466 = vrot.lane.b32.xlu1 %v1316_v10, %s1770_s10  ;;  %v1329_v42 = vrot.slane %v1615_v19, %v1844_v26  ;;  %v1345_v43 = vrot.slane %v1617_v20, %v1844_v26  ;;  %v1361_v44 = vrot.slane %v1619_v21, %v1844_v26  ;;  %v1377_v45 = vrot.slane %v1621_v63, %v1844_v26 }
 0x335   : > { %v1145_v46 = vcombine.low %v1089_v37, %v1105_v39  ;;  %v1146_v47 = vcombine.high %v1089_v37, %v1105_v39  ;;  %v1161_v48 = vcombine.low %v1096_v38, %v1112_v41  ;;  %v1162_v49 = vcombine.high %v1096_v38, %v1112_v41 }
 0x336   : > { %v1385_v50 = vcombine.low %v1329_v42, %v1345_v43  ;;  %v1417_v51 = vcombine.low %v1361_v44, %v1377_v45  ;;  %v1200_v54 = vrot.slane %v1608_v33, %v1844_v26  ;;  %v1216_v0 = vrot.slane %v1610_v34, %v1844_v26 }
 0x337   : > { %v1153_v55 = vrot.slane %v1145_v46, %v1852_v40  ;;  %v1160_v56 = vrot.slane %v1146_v47, %v1852_v40  ;;  %v1169_v57 = vrot.slane %v1161_v48, %v1852_v40  ;;  %v1176_v58 = vrot.slane %v1162_v49, %v1852_v40 }
 0x338   : > { %v2000_v59 = vrot.slane %v1385_v50, %v1852_v40  ;;  %v2003_v60 = vrot.slane %v1417_v51, %v1852_v40  ;;  %v1232_v61 = vrot.slane %v1612_v35, %v1844_v26  ;;  %v1248_v62 = vrot.slane %v1614_v36, %v1844_v26 }
 0x339   : > { %v1616_v1 = vcombine.low %v1153_v55, %v1160_v56  ;;  %v1618_v2 = vcombine.high %v1153_v55, %v1160_v56  ;;  %v1620_v4 = vcombine.low %v1169_v57, %v1176_v58  ;;  %v1622_v5 = vcombine.high %v1169_v57, %v1176_v58  ;;  %v1532_v55 = vld [vmem:[%s2061_s2] sm:$0xff] }
 0x33a   : > { %v1450_v6 = vcombine.high %v2000_v59, %v2003_v60  ;;  %v1265_v7 = vcombine.low %v1200_v54, %v1216_v0  ;;  %v1297_v8 = vcombine.low %v1232_v61, %v1248_v62  ;;  %v1386_v9 = vcombine.high %v1329_v42, %v1345_v43 }
 0x33b   : > { %v1418_v3 = vcombine.high %v1361_v44, %v1377_v45  ;;  %v1336_v10 = vrot.slane %v1616_v1, %v1844_v26  ;;  %v1352_v14 = vrot.slane %v1618_v2, %v1844_v26  ;;  %v1368_v16 = vrot.slane %v1620_v4, %v1844_v26 }
 0x33c   : > { %1486 = vrot.lane.b32.xlu0 %v1450_v6, %s1732_s21  ;;  %v1273_v11 = vrot.slane %v1265_v7, %v1852_v40  ;;  %v1305_v12 = vrot.slane %v1297_v8, %v1852_v40  ;;  %v1400_v13 = vrot.slane %v1386_v9, %v1852_v40  ;;  %v1266_v18 = vcombine.high %v1200_v54, %v1216_v0  ;;  %s1771_s21 = smov 64   ;;  %v1533_v6 = vld [vmem:[%s2061_s2 + $0x8] sm:$0xff] }
 0x33d   : > { %v1432_v15 = vrot.slane %v1418_v3, %v1852_v40  ;;  %v1298_v19 = vcombine.high %v1232_v61, %v1248_v62  ;;  %v1384_v20 = vrot.slane %v1622_v5, %v1844_v26  ;;  %v1401_v63 = vcombine.low %v1336_v10, %v1352_v14 }
 0x33e   : > { %v1317_v17 = vcombine.low %v1273_v11, %v1305_v12  ;;  %v1313_v23 = vcombine.low %v1957_v52, %v1960_v53  ;;  %v1449_v24 = vcombine.low %v2000_v59, %v2003_v60  ;;  %v1318_v25 = vcombine.high %v1273_v11, %v1305_v12 }
 0x33f   : > { %v1451_v21 = vcombine.low %v1400_v13, %v1432_v15  ;;  %v1433_v22 = vcombine.low %v1368_v16, %v1384_v20  ;;  %v1280_v27 = vrot.slane %v1266_v18, %v1852_v40  ;;  %v1312_v28 = vrot.slane %v1298_v19, %v1852_v40 }
 0x340   : > { %1470 = vrot.lane.b32.xlu1 %v1317_v17, %s1771_s21  ;;  %v1452_v29 = vcombine.high %v1400_v13, %v1432_v15  ;;  %v1409_v26 = vrot.slane %v1401_v63, %v1852_v40  ;;  %v1402_v52 = vcombine.high %v1336_v10, %v1352_v14  ;;  %v1434_v53 = vcombine.high %v1368_v16, %v1384_v20 }
 0x341   : > { %1490 = vrot.lane.b32.xlu0 %v1451_v21, %s1735_s24  ;;  %v1441_v30 = vrot.slane %v1433_v22, %v1852_v40  ;;  %v1319_v31 = vcombine.low %v1280_v27, %v1312_v28  ;;  %s1773_s24 = smov 96   ;;  %v1320_v33 = vcombine.high %v1280_v27, %v1312_v28 }
 0x342   : > { %v1416_v35 = vrot.slane %v1402_v52, %v1852_v40  ;;  %v1448_v36 = vrot.slane %v1434_v53, %v1852_v40 }
 0x343   : > { %v1453_v32 = vcombine.low %v1409_v26, %v1441_v30  ;;  %v1454_v34 = vcombine.high %v1409_v26, %v1441_v30 }
 0x344   : > { %1474 = vrot.lane.b32.xlu1 %v1318_v25, %s1772_s11  ;;  %v1455_v37 = vcombine.low %v1416_v35, %v1448_v36  ;;  %v1456_v38 = vcombine.high %v1416_v35, %v1448_v36 }
 0x345   : > { %1494 = vrot.lane.b32.xlu0 %v1452_v29, %s1770_s10 }
 0x348   : > { %1478 = vrot.lane.b32.xlu1 %v1319_v31, %s1773_s24 }
 0x349   : > { %1498 = vrot.lane.b32.xlu0 %v1453_v32, %s1771_s21 }
 0x34c   : > { %1482 = vrot.lane.b32.xlu1 %v1320_v33, %s1764_s4 }
 0x34d   : > { %1502 = vrot.lane.b32.xlu0 %v1454_v34, %s1772_s11 }
 0x351   : > { %1506 = vrot.lane.b32.xlu0 %v1455_v37, %s1773_s24 }
 0x355   : > { %1510 = vrot.lane.b32.xlu0 %v1456_v38, %s1764_s4 }
 0x39e   : > { %v1459_v39 = vpop.permute.xlu1 %1458 }
 0x39f   : > { %v1513_v40 = vsel %vm533_vm3, %v1313_v23, %v1459_v39 }
 0x3a2   : > { %v1463_v41 = vpop.permute.xlu1 %1462 }
 0x3a3   : > { %v1514_v48 = vsel %vm549_vm10, %v1513_v40, %v1463_v41 }
 0x3a6   : > { %v1467_v42 = vpop.permute.xlu1 %1466 }
 0x3a7   : > { %v1516_v50 = vsel %vm1515_vm4, %v1514_v48, %v1467_v42 }
 0x3ae   : > { %v1487_v43 = vpop.permute.xlu0 %1486 }
 0x3af   : > { %v1525_v61 = vsel %vm533_vm3, %v1449_v24, %v1487_v43 }
 0x3b2   : > { %v1471_v44 = vpop.permute.xlu1 %1470 }
 0x3b3   : > { %v1491_v45 = vpop.permute.xlu0 %1490  ;;  %v1518_v54 = vsel %vm1517_vm6, %v1516_v50, %v1471_v44 }
 0x3b4   : > { %v1526_v62 = vsel %vm549_vm10, %v1525_v61, %v1491_v45 }
 0x3b6   : > { %v1475_v46 = vpop.permute.xlu1 %1474 }
 0x3b7   : > { %v1495_v47 = vpop.permute.xlu0 %1494  ;;  %v1520_v0 = vsel %vm1519_vm7, %v1518_v54, %v1475_v46 }
 0x3b8   : > { %v1527_v2 = vsel %vm1515_vm4, %v1526_v62, %v1495_v47 }
 0x3ba   : > { %v1479_v49 = vpop.permute.xlu1 %1478 }
 0x3bb   : > { %v1499_v51 = vpop.permute.xlu0 %1498  ;;  %v1522_v56 = vsel %vm1521_vm8, %v1520_v0, %v1479_v49 }
 0x3bc   : > { %v1528_v4 = vsel %vm1517_vm6, %v1527_v2, %v1499_v51 }
 0x3be   : > { %v1483_v57 = vpop.permute.xlu1 %1482 }
 0x3bf   : > { %v1524_v58 = vsel %vm1523_vm9, %v1522_v56, %v1483_v57  ;;  %v1503_v59 = vpop.permute.xlu0 %1502 }
 0x3c0   : > { %v1534_v60 = vadd.f32 %v1532_v55, %v1524_v58  ;;  %v1529_v5 = vsel %vm1519_vm7, %v1528_v4, %v1503_v59 }
 0x3c2   : > { %1536 = vst [vmem:[%s170_s19] sm:$0xff] %v1534_v60 }
 0x3c3   : > { %v1507_v1 = vpop.permute.xlu0 %1506 }
 0x3c4   : > { %v1530_v7 = vsel %vm1521_vm8, %v1529_v5, %v1507_v1 }
 0x3c7   : > { %v1511_v8 = vpop.permute.xlu0 %1510 }
 0x3c8   : > { %v1531_v9 = vsel %vm1523_vm9, %v1530_v7, %v1511_v8 }
 0x3c9   : > { %v1535_v3 = vadd.f32 %v1533_v6, %v1531_v9 }
 0x3cb   : > { %1537 = vst [vmem:[%s170_s19 + $0x8] sm:$0xff] %v1535_v3 }
 0x3cc PF: > { %s13_s12 = sadd.s32 1, %s1725_s12  }
 0x3cd   : > { %p10_p4 = scmp.ge.s32.totalorder %s13_s12, 4  }
 0x3cf   :  { %12 = sbr.rel (!%p10_p4) target bundleno = 1 (0x1), region = 62 }

</bundles_post_ra>
